<compile_context>
chip_gen: v7x
topology: tpu7x:2x2x1
jax: 0.10.0
libtpu: 0.0.40
codegen_flags: <defaults>
</compile_context>

<pallas_src>
import jax
import jax.numpy as jnp
from jax.experimental import pallas as pl
from jax.experimental.pallas import tpu as pltpu

_LANE = 128


def _round_up(x, m):
    return ((x + m - 1) // m) * m


def _pad2d(x, rows, cols):
    pr, pc = rows - x.shape[0], cols - x.shape[1]
    if pr == 0 and pc == 0:
        return x
    return jnp.pad(x, ((0, pr), (0, pc)))


def _critic_kernel(x_ref, w1_ref, b1_ref, w2_ref, b2_ref, w3_ref, o_ref):
    """One batch tile of the fused 3-layer MLP.

    x:  (block_b, state_pad)   activations, f32
    w*: (in_pad,  out_pad)     weights (f32 or bf16), zero-padded
    b*: (1, hidden_pad)        biases, f32
    o:  (block_b, 128)         value slab; only lane/column 0 is meaningful
    """
    cdt = w1_ref.dtype  # MXU operand dtype (f32 or bf16); accumulation is always f32

    x = x_ref[...].astype(cdt)
    h1 = jnp.dot(x, w1_ref[...], preferred_element_type=jnp.float32) + b1_ref[...]
    h1 = jnp.maximum(h1, 0.0)                           # f32 elementwise (v5e friendly)

    h2 = jnp.dot(h1.astype(cdt), w2_ref[...],
                 preferred_element_type=jnp.float32) + b2_ref[...]
    h2 = jnp.maximum(h2, 0.0)

    # Layer 3: w3 is zero-padded to a (hidden_pad, 128) slab so both the MXU result and
    # the output store are lane-dense (no width-1 matmul, no masked partial stores).
    out = jnp.dot(h2.astype(cdt), w3_ref[...], preferred_element_type=jnp.float32)
    o_ref[...] = out.astype(o_ref.dtype)


def centralized_critic_forward(states, params, *, block_b=None):
    """states: (B, state_dim) float32. Returns (B, 1) float32 values."""
    w1, b1, w2, b2, w3, b3 = params
    B, state_dim = states.shape
    hidden_dim = w1.shape[1]

    state_p = _round_up(state_dim, _LANE)
    hidden_p = _round_up(hidden_dim, _LANE)

    if block_b is None:
        # <=512-row tiles: big enough to amortize per-step overhead and approach the HBM
        # roofline, small enough to pipeline and (for B > 512) to give v7x's two
        # TensorCores at least two grid steps on the "parallel" axis.
        n_tiles = pl.cdiv(B, 512)
        block_b = _round_up(pl.cdiv(B, n_tiles), 8)
    block_b = max(8, _round_up(block_b, 8))
    b_pad = _round_up(B, block_b)
    grid = (b_pad // block_b,)

    f32 = jnp.float32
    # Zero-padding keeps the math exact: padded rows/cols of x and the weights are zero.
    x_p = _pad2d(states.astype(f32), b_pad, state_p)
    w1_p = _pad2d(w1, state_p, hidden_p)
    b1_p = _pad2d(b1.reshape(1, -1).astype(f32), 1, hidden_p)
    w2_p = _pad2d(w2, hidden_p, hidden_p)
    b2_p = _pad2d(b2.reshape(1, -1).astype(f32), 1, hidden_p)
    w3_p = _pad2d(w3, hidden_p, _LANE)          # real value column lives in lane 0

    # Explicit VMEM budget: double-buffered states/out tiles + weights + h1/h2
    # intermediates.  NOTE: for very large state_dim (huge concatenated multi-agent
    # observations) a K-reduction grid axis with a VMEM accumulator would be the next
    # step; not needed at these sizes.
    w_bytes = jnp.dtype(w1_p.dtype).itemsize
    vmem_est = (
        2 * block_b * state_p * 4
        + 2 * block_b * _LANE * 4
        + 2 * (state_p * hidden_p + hidden_p * hidden_p + hidden_p * _LANE) * w_bytes
        + 2 * 2 * 8 * hidden_p * 4
        + 2 * block_b * hidden_p * 4
    )
    vmem_limit = int(min(max(vmem_est + (4 << 20), 32 << 20), 100 << 20))

    const = lambda shape: pl.BlockSpec(shape, lambda i: (0, 0))  # same block every step

    out = pl.pallas_call(
        _critic_kernel,
        out_shape=jax.ShapeDtypeStruct((b_pad, _LANE), f32),
        grid_spec=pltpu.PrefetchScalarGridSpec(
            num_scalar_prefetch=0,
            grid=grid,
            in_specs=[
                pl.BlockSpec((block_b, state_p), lambda i: (i, 0)),   # states tile
                const((state_p, hidden_p)),                           # W1
                const((1, hidden_p)),                                 # b1
                const((hidden_p, hidden_p)),                          # W2
                const((1, hidden_p)),                                 # b2
                const((hidden_p, _LANE)),                             # W3 slab
            ],
            out_specs=pl.BlockSpec((block_b, _LANE), lambda i: (i, 0)),
        ),
        compiler_params=pltpu.CompilerParams(
            dimension_semantics=("parallel",),
            vmem_limit_bytes=vmem_limit,
        ),
    )(x_p, w1_p, b1_p, w2_p, b2_p, w3_p)

    # Slice the real value column off the lane-dense slab; add the scalar output bias
    # here (cheaper than carrying a padded (1,1) VMEM block through the kernel pipeline).
    return out[:B, :1] + b3.reshape(1, 1).astype(f32)


def init_params(key, state_dim, hidden_dim, param_dtype=jnp.float32):
    """Xavier-uniform weights, zero biases (matches CentralizedCritic.init_weights).
    Weights stored as (in_features, out_features).  param_dtype=jnp.bfloat16 halves
    weight HBM/VMEM traffic on v6e/v7x; f32 accumulation is preserved in the kernel."""
    def xavier(k, fan_in, fan_out):
        bound = jnp.sqrt(6.0 / (fan_in + fan_out))
        w = jax.random.uniform(k, (fan_in, fan_out), jnp.float32, -bound, bound)
        return w.astype(param_dtype)

    k1, k2, k3 = jax.random.split(key, 3)
    return (
        xavier(k1, state_dim, hidden_dim), jnp.zeros((hidden_dim,), jnp.float32),
        xavier(k2, hidden_dim, hidden_dim), jnp.zeros((hidden_dim,), jnp.float32),
        xavier(k3, hidden_dim, 1), jnp.zeros((1,), jnp.float32),
    )


def reference_forward(states, params):
    w1, b1, w2, b2, w3, b3 = params
    f32 = jnp.float32
    h1 = jnp.maximum(states @ w1.astype(f32) + b1, 0.0)
    h2 = jnp.maximum(h1 @ w2.astype(f32) + b2, 0.0)
    return h2 @ w3.astype(f32) + b3


if __name__ == "__main__":
    key = jax.random.PRNGKey(0)
    k_params, k_states = jax.random.split(key)

    # Small shapes; batch=20 (not a multiple of the tile) exercises padding of the
    # ragged last tile, and block_b=8 gives a 3-step grid to exercise the pipeline.
    batch, state_dim, hidden_dim = 20, 16, 32
    params = init_params(k_params, state_dim, hidden_dim)
    states = jax.random.normal(k_states, (batch, state_dim), jnp.float32)

    values = centralized_critic_forward(states, params, block_b=8)
    values = jax.block_until_ready(values)

    ref = reference_forward(states, params)
    assert values.shape == (batch, 1)
    assert jnp.allclose(values, ref, atol=1e-4, rtol=1e-4), float(
        jnp.max(jnp.abs(values - ref)))

    print("KERNEL_OK")
</pallas_src>

<mosaic_0001>
module attributes {stable_mosaic.version = 11 : i64} {
  func.func @_critic_kernel(%arg0: i32, %arg1: memref<8x128xf32, #tpu.memory_space<vmem>>, %arg2: memref<128x128xf32, #tpu.memory_space<vmem>>, %arg3: memref<1x128xf32, #tpu.memory_space<vmem>>, %arg4: memref<128x128xf32, #tpu.memory_space<vmem>>, %arg5: memref<1x128xf32, #tpu.memory_space<vmem>>, %arg6: memref<128x128xf32, #tpu.memory_space<vmem>>, %arg7: memref<8x128xf32, #tpu.memory_space<vmem>>) attributes {dimension_semantics = [#tpu.dimension_semantics<parallel>], iteration_bounds = array<i64: 3>, scalar_prefetch = 0 : i64, scratch_operands = 0 : i64, tpu.core_type = #tpu.core_type<tc>, window_params = [{transform_indices = @transform_0, window_bounds = array<i64: 8, 128>}, {pipeline_mode = #tpu.pipeline_mode<synchronous>, transform_indices = @transform_1, window_bounds = array<i64: 128, 128>}, {pipeline_mode = #tpu.pipeline_mode<synchronous>, transform_indices = @transform_2, window_bounds = array<i64: 1, 128>}, {pipeline_mode = #tpu.pipeline_mode<synchronous>, transform_indices = @transform_3, window_bounds = array<i64: 128, 128>}, {pipeline_mode = #tpu.pipeline_mode<synchronous>, transform_indices = @transform_4, window_bounds = array<i64: 1, 128>}, {pipeline_mode = #tpu.pipeline_mode<synchronous>, transform_indices = @transform_5, window_bounds = array<i64: 128, 128>}, {transform_indices = @transform_6, window_bounds = array<i64: 8, 128>}]} {
    %c0 = arith.constant 0 : index
    %c0_0 = arith.constant 0 : index
    %0 = vector.load %arg1[%c0, %c0_0] : memref<8x128xf32, #tpu.memory_space<vmem>>, vector<8x128xf32>
    %c0_1 = arith.constant 0 : index
    %c0_2 = arith.constant 0 : index
    %1 = vector.load %arg2[%c0_1, %c0_2] : memref<128x128xf32, #tpu.memory_space<vmem>>, vector<128x128xf32>
    %cst = arith.constant dense<0.000000e+00> : vector<8x128xf32>
    %2 = tpu.matmul %0, %1, %cst {dimension_numbers = #tpu.dot_dimension_numbers<[1], [0], [0], [1], [0, 0, 1, 1], [], []>} : vector<8x128xf32>, vector<128x128xf32>, vector<8x128xf32> -> vector<8x128xf32>
    %c0_3 = arith.constant 0 : index
    %c0_4 = arith.constant 0 : index
    %3 = vector.load %arg3[%c0_3, %c0_4] : memref<1x128xf32, #tpu.memory_space<vmem>>, vector<1x128xf32>
    %4 = vector.broadcast %3 : vector<1x128xf32> to vector<8x128xf32>
    %5 = arith.addf %2, %4 : vector<8x128xf32>
    %cst_5 = arith.constant 0.000000e+00 : f32
    %6 = vector.broadcast %cst_5 : f32 to vector<8x128xf32>
    %7 = arith.maximumf %5, %6 : vector<8x128xf32>
    %c0_6 = arith.constant 0 : index
    %c0_7 = arith.constant 0 : index
    %8 = vector.load %arg4[%c0_6, %c0_7] : memref<128x128xf32, #tpu.memory_space<vmem>>, vector<128x128xf32>
    %cst_8 = arith.constant dense<0.000000e+00> : vector<8x128xf32>
    %9 = tpu.matmul %7, %8, %cst_8 {dimension_numbers = #tpu.dot_dimension_numbers<[1], [0], [0], [1], [0, 0, 1, 1], [], []>} : vector<8x128xf32>, vector<128x128xf32>, vector<8x128xf32> -> vector<8x128xf32>
    %c0_9 = arith.constant 0 : index
    %c0_10 = arith.constant 0 : index
    %10 = vector.load %arg5[%c0_9, %c0_10] : memref<1x128xf32, #tpu.memory_space<vmem>>, vector<1x128xf32>
    %11 = vector.broadcast %10 : vector<1x128xf32> to vector<8x128xf32>
    %12 = arith.addf %9, %11 : vector<8x128xf32>
    %cst_11 = arith.constant 0.000000e+00 : f32
    %13 = vector.broadcast %cst_11 : f32 to vector<8x128xf32>
    %14 = arith.maximumf %12, %13 : vector<8x128xf32>
    %c0_12 = arith.constant 0 : index
    %c0_13 = arith.constant 0 : index
    %15 = vector.load %arg6[%c0_12, %c0_13] : memref<128x128xf32, #tpu.memory_space<vmem>>, vector<128x128xf32>
    %cst_14 = arith.constant dense<0.000000e+00> : vector<8x128xf32>
    %16 = tpu.matmul %14, %15, %cst_14 {dimension_numbers = #tpu.dot_dimension_numbers<[1], [0], [0], [1], [0, 0, 1, 1], [], []>} : vector<8x128xf32>, vector<128x128xf32>, vector<8x128xf32> -> vector<8x128xf32>
    %c0_15 = arith.constant 0 : index
    %c0_16 = arith.constant 0 : index
    %17 = vector.load %arg7[%c0_15, %c0_16] : memref<8x128xf32, #tpu.memory_space<vmem>>, vector<8x128xf32>
    tpu.vector_store %arg7[%c0_15, %c0_16], %16 {strides = array<i32>} : memref<8x128xf32, #tpu.memory_space<vmem>>, vector<8x128xf32>,
    return
  }
  func.func @transform_0(%arg0: i32) -> (i32, i32) {
    %c0_i32 = arith.constant 0 : i32
    %c0_i32_0 = arith.constant 0 : i32
    return %arg0, %c0_i32 : i32, i32
  }
  func.func @transform_1(%arg0: i32) -> (i32, i32) {
    %c0_i32 = arith.constant 0 : i32
    %c0_i32_0 = arith.constant 0 : i32
    %c0_i32_1 = arith.constant 0 : i32
    return %c0_i32, %c0_i32_0 : i32, i32
  }
  func.func @transform_2(%arg0: i32) -> (i32, i32) {
    %c0_i32 = arith.constant 0 : i32
    %c0_i32_0 = arith.constant 0 : i32
    %c0_i32_1 = arith.constant 0 : i32
    return %c0_i32, %c0_i32_0 : i32, i32
  }
  func.func @transform_3(%arg0: i32) -> (i32, i32) {
    %c0_i32 = arith.constant 0 : i32
    %c0_i32_0 = arith.constant 0 : i32
    %c0_i32_1 = arith.constant 0 : i32
    return %c0_i32, %c0_i32_0 : i32, i32
  }
  func.func @transform_4(%arg0: i32) -> (i32, i32) {
    %c0_i32 = arith.constant 0 : i32
    %c0_i32_0 = arith.constant 0 : i32
    %c0_i32_1 = arith.constant 0 : i32
    return %c0_i32, %c0_i32_0 : i32, i32
  }
  func.func @transform_5(%arg0: i32) -> (i32, i32) {
    %c0_i32 = arith.constant 0 : i32
    %c0_i32_0 = arith.constant 0 : i32
    %c0_i32_1 = arith.constant 0 : i32
    return %c0_i32, %c0_i32_0 : i32, i32
  }
  func.func @transform_6(%arg0: i32) -> (i32, i32) {
    %c0_i32 = arith.constant 0 : i32
    %c0_i32_0 = arith.constant 0 : i32
    return %arg0, %c0_i32 : i32, i32
  }
}

</mosaic_0001>

<bundles_post_ra>
// kernel: tpu_custom_call.1
= control target key start
LH: loop header
LB: loop body
LE: loop exit
PB: predicated region body
PF: predicated region fallthrough
CT: control target
= control target key end

     0   :  { %11 = vsyncpa [#allocation3], 0  ;;  %s1569_s0 = inlined_call_operand.hbm [shape: f32[24,128], index: 0, kind: input, shape index: {}]   ;;  %s1570_s1 = inlined_call_operand.hbm [shape: f32[128,128], index: 1, kind: input, shape index: {}]   ;;  %s1571_s2 = inlined_call_operand.vmem [shape: f32[1,128], index: 2, kind: input, shape index: {}]   ;;  %s1572_s3 = inlined_call_operand.hbm [shape: f32[128,128], index: 3, kind: input, shape index: {}]   ;;  %s1573_s4 = inlined_call_operand.vmem [shape: f32[1,128], index: 4, kind: input, shape index: {}]   ;;  %s1574_s5 = inlined_call_operand.hbm [shape: f32[128,128], index: 5, kind: input, shape index: {}]   ;;  %s1575_s6 = inlined_call_operand.hbm [shape: f32[24,128], index: 6, kind: output, shape index: {}]  }
   0x1   :  { %13 = vsyncpa [#allocation3 + $0x1], 0 }
   0x2   :  { %14 = vsyncpa [#allocation6], 0 }
   0x3   :  { %15 = vsyncpa [#allocation9], 0 }
   0x4   :  { %16 = vsyncpa [#allocation4], 0 }
   0x5   :  { %18 = vsyncpa [#allocation4 + $0x1], 0  ;;  %s1265_s21 = smov 0   ;;  %s1267_s22 = smov 0  }
   0x6   :  { %s1269_s23 = smov 0   ;;  %s1271_s24 = smov 0  }
   0x7 LB: > { %s1286_s25 = sadd.s32 4294967295, %s1218_s24   ;;  %s700_s26 = sadd.s32 4294967294, %s1218_s24   ;;  %s1218_s24 = sphi %s1271_s24, %s1597_s24   ;;  %s1214_s23 = sphi %s1269_s23, %s1596_s23   ;;  %s1210_s22 = sphi %s1267_s22, %s1595_s22   ;;  %s1206_s21 = sphi %s1265_s21, %s1594_s21  }
   0x8   : > { %p44_p0 = scmp.ne.s32.totalorder %s1210_s22, %s1206_s21  ;;  %p1576_p1 = scmp.eq.s32.totalorder %s1286_s25, 0 }
   0x9   : > { %p179_p3 = scmp.eq.s32.totalorder %s700_s26, 2  ;;  %p701_p5 = scmp.ge.s32.totalorder %s1218_s24, 1 }
   0xa   : > { %p1295_p4 = por %p1576_p1, %p44_p0  ;;  %p186_p7 = scmp.lt.s32.totalorder %s1218_s24, 4 }
   0xb   : > { %p1300_p6 = por %p179_p3, %p44_p0  ;;  %s1220_s30 = smov [#allocation5]  }
   0xc   : > { %s1579_s27 = scalar_select %p1295_p4, 1, 0 }
   0xd   : > { %s1580_s28 = scalar_select %p1300_p6, 1, 0 }
   0xe   : > { %p1305_p8 = pnand %p701_p5, %p186_p7  ;;  %s198_s7 = sshll.u32 %s1220_s30, 4  ;;  %s1309_s7 = int_to_ptr.vmem [resolvable:$true] %s198_s7 }
   0xf   : > { %s1221_s9 = smov [#allocation7]   ;;  %s1222_s11 = smov [#allocation8]  }
  0x10   : > { %s1581_s29 = scalar_select %p1305_p8, 1, 0 }
  0x11   : > { %p964_p9 = pneg %p1305_p8  ;;  %s214_s10 = sshll.u32 %s1221_s9, 4  ;;  %s1319_s10 = int_to_ptr.vmem [resolvable:$true] %s214_s10 }
  0x12   : > { %s1321_s12 = sshll.u32 %s1222_s11, 4  ;;  %s1030_s15 = scalar_lea.hbm %s1570_s1, 2048  ;;  %s231_s12 = int_to_ptr.vmem [resolvable:$true] %s1321_s12 }
  0x13   : > { %p1315_p10 = pnand %p964_p9, %p1576_p1  ;;  %p1031_p11 = scmp.ne.s32.totalorder %s1570_s1, %s1030_s15 }
  0x14   : > { %p1037_p3 = scmp.lt.u32.totalorder %s1030_s15, %s1570_s1 }
  0x15   : > { %p1331_p12 = pneg %p1315_p10 }
  0x17   : > { %p1033_p13 = pnand %p1331_p12, %p1031_p11 }
  0x19   : > { %p1034_p0 = pneg %p1033_p13 }
  0x1b   : > { %p1039_p5 = pnand %p1037_p3, %p1034_p0 }
  0x1d   : > { %1042 = shalt.err (!%p1039_p5)
}
  0x1e   : > { %s1043_s26 = scalar_lea.vmem %s1309_s7, 2048  ;;  %p1051_p2 = scmp.lt.s32.totalorder %s1309_s7, %s1309_s7 }
  0x1f   : > { %p1044_p7 = scmp.ne.s32.totalorder %s1309_s7, %s1043_s26  ;;  %p1052_p6 = scmp.lt.s32.totalorder %s1043_s26, %s1043_s26 }
  0x21   : > { %p1046_p9 = pnand %p1044_p7, %p1331_p12  ;;  %p1053_p11 = por %p1052_p6, %p1051_p2 }
  0x23   : > { %p1047_p1 = pneg %p1046_p9 }
  0x25   : > { %p1054_p13 = pnand %p1053_p11, %p1047_p1 }
  0x27   : > { %1057 = shalt.err (!%p1054_p13)
}
  0x28   : > { %s1223_s30 = smov 128   ;;  %s1224_s9 = smov 8  }
  0x29   : > { %967 = dma.hbm_to_vmem [thread:$0]  (!%p1315_p10), %s1570_s1, 2048, %s1309_s7, [#allocation6], %s1223_s30, %s1223_s30, %s1224_s9  }
  0x2a   : > { %s1058_s16 = scalar_lea.hbm %s1572_s3, 2048 }
  0x2b   : > { %p1059_p1 = scmp.ne.s32.totalorder %s1572_s3, %s1058_s16  ;;  %p1065_p0 = scmp.lt.u32.totalorder %s1058_s16, %s1572_s3 }
  0x2d   : > { %p1061_p2 = pnand %p1059_p1, %p1331_p12 }
  0x2f   : > { %p1062_p6 = pneg %p1061_p2 }
  0x31   : > { %p1067_p3 = pnand %p1065_p0, %p1062_p6 }
  0x33   : > { %1070 = shalt.err (!%p1067_p3)
}
  0x34   : > { %s1071_s7 = scalar_lea.vmem %s1319_s10, 2048  ;;  %p1079_p11 = scmp.lt.s32.totalorder %s1319_s10, %s1319_s10 }
  0x35   : > { %p1072_p5 = scmp.ne.s32.totalorder %s1319_s10, %s1071_s7  ;;  %p1080_p13 = scmp.lt.s32.totalorder %s1071_s7, %s1071_s7 }
  0x37   : > { %p1074_p7 = pnand %p1072_p5, %p1331_p12  ;;  %p1081_p1 = por %p1080_p13, %p1079_p11 }
  0x39   : > { %p1075_p9 = pneg %p1074_p7 }
  0x3b   : > { %p1082_p2 = pnand %p1081_p1, %p1075_p9 }
  0x3d   : > { %1085 = shalt.err (!%p1082_p2)
}
  0x3e   : > { %970 = dma.hbm_to_vmem [thread:$0]  (!%p1315_p10), %s1572_s3, 2048, %s1319_s10, [#allocation6], %s1223_s30, %s1223_s30, %s1224_s9  }
  0x3f   : > { %s1086_s16 = scalar_lea.hbm %s1574_s5, 2048 }
  0x40   : > { %p1087_p6 = scmp.ne.s32.totalorder %s1574_s5, %s1086_s16  ;;  %p1093_p5 = scmp.lt.u32.totalorder %s1086_s16, %s1574_s5 }
  0x42   : > { %p1089_p0 = pnand %p1087_p6, %p1331_p12 }
  0x44   : > { %p1090_p3 = pneg %p1089_p0 }
  0x46   : > { %p1095_p7 = pnand %p1093_p5, %p1090_p3 }
  0x48   : > { %1098 = shalt.err (!%p1095_p7)
}
  0x49   : > { %s1099_s7 = scalar_lea.vmem %s231_s12, 2048  ;;  %p1107_p1 = scmp.lt.s32.totalorder %s231_s12, %s231_s12 }
  0x4a   : > { %p1100_p9 = scmp.ne.s32.totalorder %s231_s12, %s1099_s7  ;;  %p1108_p2 = scmp.lt.s32.totalorder %s1099_s7, %s1099_s7 }
  0x4c   : > { %p1102_p11 = pnand %p1100_p9, %p1331_p12  ;;  %p1109_p4 = por %p1108_p2, %p1107_p1 }
  0x4e   : > { %p1103_p13 = pneg %p1102_p11 }
  0x50   : > { %p1110_p8 = pnand %p1109_p4, %p1103_p13 }
  0x52   : > { %1113 = shalt.err (!%p1110_p8)
}
  0x53   : > { %973 = dma.hbm_to_vmem [thread:$0]  (!%p1315_p10), %s1574_s5, 2048, %s231_s12, [#allocation9], %s1223_s30, %s1223_s30, %s1224_s9  }
  0x54   : > { %s1404_s18 = sadd.s32 1, %s1218_s24   ;;  %s31_s13 = sadd.s32 1, %s1214_s23 }
  0x55   : > { %s28_s8 = ssub.s32 %s1218_s24, %s1404_s18  ;;  %p38_p8 = scmp.ne.s32.totalorder %s1214_s23, %s1210_s22 }
  0x56   : > { %p29_p4 = scmp.eq.s32.totalorder %s28_s8, 0  ;;  %p39_p12 = scmp.eq.s32.totalorder %s1218_s24, 0 }
  0x57   : > { %p985_p6 = scmp.lt.s32.totalorder %s1218_s24, 3  ;;  %p1584_p3 = scmp.eq.s32.totalorder %s1286_s25, 2 }
  0x58   : > { %s1414_s14 = scalar_select %p29_p4, %s1214_s23, %s31_s13  }
  0x59   : > { %p40_p0 = por %p39_p12, %p38_p8  ;;  %p1418_p5 = por %p1584_p3, %p38_p8 }
  0x5a   : > { %s244_s16 = sand.u32 1, %s1214_s23   ;;  %s707_s17 = sshll.u32 %s1218_s24, 7 }
  0x5b   : > { %s706_s12 = sshll.u32 %s244_s16, 3  ;;  %s1427_s19 = scalar_lea.hbm %s1569_s0, %s707_s17 }
  0x5c   : > { %s248_s20 = scalar_lea.vmem [#allocation2], %s706_s12  ;;  %p1429_p10 = pnand %p985_p6, %p40_p0 }
  0x5d   : > { %s255_s26 = sshll.u32 %s248_s20, 4  ;;  %s245_s10 = scalar_lea.sflag [#allocation3], %s244_s16  ;;  %s1433_s26 = int_to_ptr.vmem [resolvable:$true] %s255_s26 }
  0x5e   : > { %s1114_s11 = scalar_lea.hbm %s1427_s19, 128  ;;  %p1116_p9 = pneg %p1429_p10 }
  0x5f   : > { %p1115_p7 = scmp.ne.s32.totalorder %s1427_s19, %s1114_s11  ;;  %s1119_s17 = scalar_lea.hbm %s1569_s0, 384 }
  0x60   : > { %p1120_p1 = scmp.lt.u32.totalorder %s1427_s19, %s1569_s0  ;;  %p1121_p2 = scmp.lt.u32.totalorder %s1119_s17, %s1114_s11 }
  0x61   : > { %p1117_p11 = pnand %p1116_p9, %p1115_p7  ;;  %p1123_p8 = scmp.lt.u32.totalorder %s1114_s11, %s1427_s19 }
  0x62   : > { %p1122_p4 = por %p1121_p2, %p1120_p1 }
  0x63   : > { %p1118_p13 = pneg %p1117_p11 }
  0x64   : > { %p1124_p12 = por %p1123_p8, %p1122_p4 }
  0x66   : > { %p1125_p6 = pnand %p1124_p12, %p1118_p13 }
  0x68   : > { %1128 = shalt.err (!%p1125_p6)
}
  0x69   : > { %s1129_s16 = scalar_lea.vmem %s1433_s26, 128  ;;  %s1225_s9 = smov [#allocation2]  }
  0x6a   : > { %p1130_p0 = scmp.ne.s32.totalorder %s1433_s26, %s1129_s16  ;;  %s1134_s20 = sshll.u32 %s1225_s9, 4  ;;  %s1135_s20 = int_to_ptr.vmem [resolvable:$false] %s1134_s20 }
  0x6b   : > { %s1136_s8 = scalar_lea.vmem %s1135_s20, 256  ;;  %p1137_p11 = scmp.lt.s32.totalorder %s1433_s26, %s1135_s20 }
  0x6c   : > { %p1132_p3 = pnand %p1130_p0, %p1116_p9  ;;  %p1138_p1 = scmp.lt.s32.totalorder %s1136_s8, %s1129_s16 }
  0x6e   : > { %p1133_p7 = pneg %p1132_p3  ;;  %p1139_p2 = por %p1138_p1, %p1137_p11 }
  0x70   : > { %p1140_p4 = pnand %p1139_p2, %p1133_p7 }
  0x72   : > { %1143 = shalt.err (!%p1140_p4)
}
  0x73   : > { %977 = dma.hbm_to_vmem [thread:$0]  (!%p1429_p10), %s1427_s19, 128, %s1433_s26, %s245_s10  }
  0x74   : > { %p1587_p13 = scmp.ne.s32.totalorder %s1581_s29, 0 }
  0x75   : > { %s1463_s11 = sand.u32 (!%p1587_p13), 1, %s1210_s22   ;;  %p1588_p9 = scmp.ne.s32.totalorder (!%p1587_p13), %s1579_s27, 0 }
  0x76   : > { %264 = sbr.rel (%p1587_p13) target bundleno = 826 (0x33a), region = 44  ;;  %s709_s13 = sshll.u32 (!%p1587_p13), %s1463_s11, 3 }
  0x77   : > { %s267_s17 = scalar_lea.sflag (!%p1587_p13), [#allocation3], %s1463_s11  ;;  %s1469_s12 = scalar_lea.vmem (!%p1587_p13), [#allocation2], %s709_s13 }
  0x7d   : > { %1189 = dma.done.wait (%p1588_p9), %s267_s17, 128  }
  0x7e   : > { %1191 = vsyncadd (%p1588_p9), %s267_s17, 4294967168  ;;  %p1589_p10 = scmp.eq.s32.totalorder %s1286_s25, 0 }
  0x80   : > { %1193 = dma.done.wait (%p1589_p10), [#allocation6], 4096   ;;  %p1590_p8 = pmov %p1589_p10 }
  0x82   : > { %1195 = vsyncadd (%p1590_p8), [#allocation6], 4294963200  ;;  %p1591_p12 = pmov %p1590_p8 }
  0x83   : > { %p1592_p6 = pmov %p1590_p8 }
  0x84   : > { %1197 = dma.done.wait (%p1591_p12), [#allocation9], 2048  }
  0x85   : > { %1199 = vsyncadd (%p1592_p6), [#allocation9], 4294965248  ;;  %v1226_v0 = vmov 0.0|0.0   ;;  %vm1227_vm0 = vmmov 0   ;;  %v1228_v1 = vmov 0.0   ;;  %v312_v2 = vld [vmem:[#allocation5] sm:$0xff] }
  0x86   : > { %876 = vmatprep.subr.bf16.mxu0 %v1226_v0  ;;  %803 = vmatprep.mubr.msk.f32.mxu0 %vm1227_vm0, %v1228_v1  ;;  %v313_v3 = vld [vmem:[#allocation5 + $0x8] sm:$0xff]  ;;  %v314_v4 = vld [vmem:[#allocation5 + $0x10] sm:$0xff]  ;;  %v315_v6 = vld [vmem:[#allocation5 + $0x18] sm:$0xff]  ;;  %s310_s7 = scalar_lea.vmem [#allocation10], %s709_s13  ;;  %s717_s30 = sshll.u32 %s1286_s25, 7 }
  0x87   : > { %900 = vmatprep.subr.bf16.mxu1 %v1226_v0  ;;  %838 = vmatprep.mubr.msk.f32.mxu1 %vm1227_vm0, %v1228_v1  ;;  %v877_v5 = vpack.c.bf16 %v313_v3, %v312_v2  ;;  %v880_v7 = vpack.c.bf16 %v315_v6, %v314_v4  ;;  %v316_v8 = vld [vmem:[#allocation5 + $0x20] sm:$0xff]  ;;  %v317_v9 = vld [vmem:[#allocation5 + $0x28] sm:$0xff]  ;;  %v408_v12 = vld [vmem:[#allocation7 + $0x10] sm:$0xff]  ;;  %s601_s10 = sshll.u32 %s310_s7, 4  ;;  %s1528_s20 = scalar_lea.hbm %s1575_s6, %s717_s30  ;;  %s1523_s10 = int_to_ptr.vmem [resolvable:$true] %s601_s10 }
  0x88   : > { %v406_v10 = vld [vmem:[#allocation7] sm:$0xff]  ;;  %v407_v11 = vld [vmem:[#allocation7 + $0x8] sm:$0xff]  ;;  %v409_v13 = vld [vmem:[#allocation7 + $0x18] sm:$0xff]  ;;  %v883_v14 = vpack.c.bf16 %v317_v9, %v316_v8  ;;  %s588_s8 = scalar_lea.sflag [#allocation4], %s1463_s11  ;;  %s1144_s17 = scalar_lea.vmem %s1523_s10, 128 }
  0x89   : > { %878 = vmatpush3.bf16.msra.mxu0 %v877_v5  ;;  %v901_v15 = vpack.c.bf16 %v407_v11, %v406_v10  ;;  %v318_v16 = vld [vmem:[#allocation5 + $0x30] sm:$0xff]  ;;  %v319_v17 = vld [vmem:[#allocation5 + $0x38] sm:$0xff]  ;;  %v904_v18 = vpack.c.bf16 %v409_v13, %v408_v12  ;;  %v410_v19 = vld [vmem:[#allocation7 + $0x20] sm:$0xff]  ;;  %p1145_p0 = scmp.ne.s32.totalorder %s1523_s10, %s1144_s17  ;;  %s1229_s25 = smov [#allocation10]  }
  0x8a   : > { %879 = vmatprep.subr.bf16.mxu0 %v1226_v0  ;;  %v411_v20 = vld [vmem:[#allocation7 + $0x28] sm:$0xff]  ;;  %v886_v21 = vpack.c.bf16 %v319_v17, %v318_v16  ;;  %v320_v22 = vld [vmem:[#allocation5 + $0x40] sm:$0xff]  ;;  %v412_v25 = vld [vmem:[#allocation7 + $0x30] sm:$0xff]  ;;  %s1148_s13 = sshll.u32 %s1229_s25, 4  ;;  %s1149_s13 = int_to_ptr.vmem [resolvable:$false] %s1148_s13 }
  0x8b   : > { %902 = vmatpush3.bf16.msra.mxu1 %v901_v15  ;;  %v321_v23 = vld [vmem:[#allocation5 + $0x48] sm:$0xff]  ;;  %v907_v24 = vpack.c.bf16 %v411_v20, %v410_v19  ;;  %v413_v26 = vld [vmem:[#allocation7 + $0x38] sm:$0xff]  ;;  %v322_v28 = vld [vmem:[#allocation5 + $0x50] sm:$0xff]  ;;  %p1146_p3 = pnand %p1145_p0, %p1418_p5  ;;  %p1151_p11 = scmp.lt.s32.totalorder %s1523_s10, %s1149_s13 }
  0x8c   : > { %903 = vmatprep.subr.bf16.mxu1 %v1226_v0  ;;  %v889_v27 = vpack.c.bf16 %v321_v23, %v320_v22  ;;  %v323_v29 = vld [vmem:[#allocation5 + $0x58] sm:$0xff]  ;;  %v910_v30 = vpack.c.bf16 %v413_v26, %v412_v25  ;;  %v414_v31 = vld [vmem:[#allocation7 + $0x40] sm:$0xff]  ;;  %v415_v32 = vld [vmem:[#allocation7 + $0x48] sm:$0xff] }
  0x8d   : > { %881 = vmatpush3.bf16.msra.mxu0 %v880_v7  ;;  %v892_v33 = vpack.c.bf16 %v323_v29, %v322_v28  ;;  %v324_v34 = vld [vmem:[#allocation5 + $0x60] sm:$0xff]  ;;  %v325_v35 = vld [vmem:[#allocation5 + $0x68] sm:$0xff]  ;;  %v913_v36 = vpack.c.bf16 %v415_v32, %v414_v31  ;;  %v416_v37 = vld [vmem:[#allocation7 + $0x50] sm:$0xff]  ;;  %p1147_p7 = pneg %p1146_p3 }
  0x8e   : > { %882 = vmatprep.subr.bf16.mxu0 %v1226_v0  ;;  %v417_v38 = vld [vmem:[#allocation7 + $0x58] sm:$0xff]  ;;  %v895_v39 = vpack.c.bf16 %v325_v35, %v324_v34  ;;  %v326_v40 = vld [vmem:[#allocation5 + $0x70] sm:$0xff]  ;;  %v418_v43 = vld [vmem:[#allocation7 + $0x60] sm:$0xff] }
  0x8f   : > { %905 = vmatpush3.bf16.msra.mxu1 %v904_v18  ;;  %v327_v41 = vld [vmem:[#allocation5 + $0x78] sm:$0xff]  ;;  %v916_v42 = vpack.c.bf16 %v417_v38, %v416_v37  ;;  %v419_v44 = vld [vmem:[#allocation7 + $0x68] sm:$0xff]  ;;  %v420_v48 = vld [vmem:[#allocation7 + $0x70] sm:$0xff] }
  0x90   : > { %906 = vmatprep.subr.bf16.mxu1 %v1226_v0  ;;  %v898_v45 = vpack.c.bf16 %v327_v41, %v326_v40  ;;  %v919_v46 = vpack.c.bf16 %v419_v44, %v418_v43  ;;  %v311_v47 = vld [vmem:[%s1469_s12] sm:$0xff]  ;;  %v500_v51 = vld [vmem:[#allocation8] sm:$0xff]  ;;  %v501_v52 = vld [vmem:[#allocation8 + $0x8] sm:$0xff]  ;;  %s1150_s12 = scalar_lea.vmem %s1149_s13, 256 }
  0x91   : > { %884 = vmatpush3.bf16.msra.mxu0 %v883_v14  ;;  %v421_v49 = vld [vmem:[#allocation7 + $0x78] sm:$0xff]  ;;  %v502_v53 = vld [vmem:[#allocation8 + $0x10] sm:$0xff]  ;;  %v925_v54 = vpack.c.bf16 %v501_v52, %v500_v51  ;;  %v504_v57 = vld [vmem:[#allocation8 + $0x20] sm:$0xff]  ;;  %p1152_p1 = scmp.lt.s32.totalorder %s1150_s12, %s1144_s17 }
  0x92   : > { %885 = vmatprep.subr.bf16.mxu0 %v1226_v0  ;;  %v922_v50 = vpack.c.bf16 %v421_v49, %v420_v48  ;;  %v503_v55 = vld [vmem:[#allocation8 + $0x18] sm:$0xff]  ;;  %v505_v58 = vld [vmem:[#allocation8 + $0x28] sm:$0xff]  ;;  %v506_v60 = vld [vmem:[#allocation8 + $0x30] sm:$0xff] }
  0x93   : > { %908 = vmatpush3.bf16.msra.mxu1 %v907_v24  ;;  %v928_v56 = vpack.c.bf16 %v503_v55, %v502_v53  ;;  %v931_v59 = vpack.c.bf16 %v505_v58, %v504_v57  ;;  %v507_v61 = vld [vmem:[#allocation8 + $0x38] sm:$0xff]  ;;  %v508_v63 = vld [vmem:[#allocation8 + $0x40] sm:$0xff]  ;;  %v510_v3 = vld [vmem:[#allocation8 + $0x50] sm:$0xff]  ;;  %p1153_p2 = por %p1152_p1, %p1151_p11 }
  0x94   : > { %909 = vmatprep.subr.bf16.mxu1 %v1226_v0  ;;  %v934_v62 = vpack.c.bf16 %v507_v61, %v506_v60  ;;  %v511_v4 = vld [vmem:[#allocation8 + $0x58] sm:$0xff]  ;;  %v512_v6 = vld [vmem:[#allocation8 + $0x60] sm:$0xff]  ;;  %v513_v7 = vld [vmem:[#allocation8 + $0x68] sm:$0xff] }
  0x95   : > { %887 = vmatpush3.bf16.msra.mxu0 %v886_v21  ;;  %v940_v5 = vpack.c.bf16 %v511_v4, %v510_v3  ;;  %v943_v8 = vpack.c.bf16 %v513_v7, %v512_v6  ;;  %v714_v9 = vld [vmem:[%s1571_s2] ss:$0 sm:$0xff]  ;;  %v515_v15 = vld [vmem:[#allocation8 + $0x78] sm:$0xff]  ;;  %p1154_p4 = pnand %p1153_p2, %p1147_p7 }
  0x96   : > { %888 = vmatprep.subr.bf16.mxu0 %v1226_v0  ;;  %v514_v14 = vld [vmem:[#allocation8 + $0x70] sm:$0xff] }
  0x97   : > { %911 = vmatpush3.bf16.msra.mxu1 %v910_v30  ;;  %v946_v16 = vpack.c.bf16 %v515_v15, %v514_v14 }
  0x98   : > { %912 = vmatprep.subr.bf16.mxu1 %v1226_v0 }
  0x99   : > { %890 = vmatpush3.bf16.msra.mxu0 %v889_v27 }
  0x9a   : > { %891 = vmatprep.subr.bf16.mxu0 %v1226_v0 }
  0x9b   : > { %914 = vmatpush3.bf16.msra.mxu1 %v913_v36 }
  0x9c   : > { %915 = vmatprep.subr.bf16.mxu1 %v1226_v0 }
  0x9d   : > { %893 = vmatpush3.bf16.msra.mxu0 %v892_v33 }
  0x9e   : > { %894 = vmatprep.subr.bf16.mxu0 %v1226_v0 }
  0x9f   : > { %917 = vmatpush3.bf16.msra.mxu1 %v916_v42 }
  0xa0   : > { %918 = vmatprep.subr.bf16.mxu1 %v1226_v0 }
  0xa1   : > { %896 = vmatpush3.bf16.msra.mxu0 %v895_v39 }
  0xa2   : > { %897 = vmatprep.subr.bf16.mxu0 %v1226_v0 }
  0xa3   : > { %920 = vmatpush3.bf16.msra.mxu1 %v919_v46 }
  0xa4   : > { %921 = vmatprep.subr.bf16.mxu1 %v1226_v0 }
  0xa5   : > { %899 = vmatpush3.bf16.msra.mxu0 %v898_v45 }
  0xa6   : > { %924 = vmatprep.subr.bf16.mxu0 %v1226_v0 }
  0xa7   : > { %923 = vmatpush3.bf16.msra.mxu1 %v922_v50 }
  0xa8   : > { %804 = vmatmul.mubr.f32.vlgmr.msra.gmra.mrb[0].mxu0 %v311_v47 }
  0xa9   : > { %873 = vmatprep.mubr.msk.f32.mxu0 %vm1227_vm0, %v1228_v1  ;;  %926 = vmatpush3.bf16.msra.mxu0 %v925_v54  ;;  %v509_v1 = vld [vmem:[#allocation8 + $0x48] sm:$0xff] }
  0xaa   : > { %927 = vmatprep.subr.bf16.mxu0 %v1226_v0  ;;  %v937_v2 = vpack.c.bf16 %v509_v1, %v508_v63 }
  0xad   : > { %929 = vmatpush3.bf16.msra.mxu0 %v928_v56 }
  0xae   : > { %930 = vmatprep.subr.bf16.mxu0 %v1226_v0 }
  0xb1   : > { %932 = vmatpush3.bf16.msra.mxu0 %v931_v59 }
  0xb2   : > { %933 = vmatprep.subr.bf16.mxu0 %v1226_v0 }
  0xb5   : > { %935 = vmatpush3.bf16.msra.mxu0 %v934_v62 }
  0xb6   : > { %936 = vmatprep.subr.bf16.mxu0 %v1226_v0 }
  0xb9   : > { %938 = vmatpush3.bf16.msra.mxu0 %v937_v2 }
  0xba   : > { %939 = vmatprep.subr.bf16.mxu0 %v1226_v0 }
  0xbd   : > { %941 = vmatpush3.bf16.msra.mxu0 %v940_v5 }
  0xbe   : > { %942 = vmatprep.subr.bf16.mxu0 %v1226_v0 }
  0xc1   : > { %944 = vmatpush3.bf16.msra.mxu0 %v943_v8 }
  0xc2   : > { %945 = vmatprep.subr.bf16.mxu0 %v1226_v0  ;;  %v715_v0 = vld [vmem:[%s1573_s4] ss:$0 sm:$0xff] }
  0xc5   : > { %947 = vmatpush3.bf16.msra.mxu0 %v946_v16 }
 0x17b   : > { %v401_v10 = vpop.f32.mrb[0].mxu0 }
 0x17c   : > { %v402_v11 = vadd.f32 %v714_v9, %v401_v10  ;;  %v805_v12 = vpop.f32.mrb[1].mxu0 }
 0x17e   : > { %v405_v13 = vmax.f32 %v402_v11, 0.0 }
 0x180   : > { %839 = vmatmul.mubr.f32.vlgmr.msra.gmra.mrb[0].mxu1 %v405_v13 }
 0x253   : > { %v495_v17 = vpop.f32.mrb[0].mxu1 }
 0x254   : > { %v496_v18 = vadd.f32 %v715_v0, %v495_v17  ;;  %v840_v19 = vpop.f32.mrb[1].mxu1 }
 0x256   : > { %v499_v20 = vmax.f32 %v496_v18, 0.0 }
 0x258   : > { %874 = vmatmul.mubr.f32.vlgmr.msra.gmra.mrb[2].mxu0 %v499_v20 }
 0x32b   : > { %v582_v21 = vpop.f32.mrb[2].mxu0 }
 0x32c   : > { %586 = vst [vmem:[%s310_s7] sm:$0xff] %v582_v21  ;;  %v875_v22 = vpop.f32.mrb[3].mxu0 }
 0x32d   : > { %1157 = shalt.err (!%p1154_p4)
}
 0x32e   : > { %s1158_s11 = scalar_lea.hbm %s1528_s20, 128  ;;  %s1162_s19 = scalar_lea.hbm %s1575_s6, 384 }
 0x32f   : > { %p1159_p13 = scmp.ne.s32.totalorder %s1528_s20, %s1158_s11  ;;  %p1163_p8 = scmp.lt.u32.totalorder %s1528_s20, %s1575_s6 }
 0x330   : > { %p1164_p12 = scmp.lt.u32.totalorder %s1162_s19, %s1158_s11  ;;  %p1166_p0 = scmp.lt.u32.totalorder %s1158_s11, %s1528_s20 }
 0x331   : > { %p1160_p9 = pnand %p1159_p13, %p1418_p5 }
 0x332   : > { %p1165_p6 = por %p1164_p12, %p1163_p8 }
 0x333   : > { %p1161_p10 = pneg %p1160_p9 }
 0x334   : > { %p1167_p3 = por %p1166_p0, %p1165_p6 }
 0x336   : > { %p1168_p7 = pnand %p1167_p3, %p1161_p10 }
 0x338   : > { %1171 = shalt.err (!%p1168_p7)
}
 0x339   : > { %962 = dma.vmem_to_hbm [thread:$0]  (%p1418_p5), %s1523_s10, 128, %s1528_s20, %s588_s8  }
 0x33a PF: > { %p989_p11 = scmp.ge.s32.totalorder %s1218_s24, 2  ;;  %s613_s30 = sand.u32 1, %s1206_s21  }
 0x33b   : > { %p1593_p1 = scmp.ne.s32.totalorder %s1580_s28, 0  ;;  %s614_s16 = scalar_lea.sflag [#allocation4], %s613_s30 }
 0x33d   : > { %p979_p2 = pnand %p989_p11, %p1593_p1 }
 0x33f   : > { %1201 = dma.done.wait (!%p979_p2), %s614_s16, 128  }
 0x340   : > { %1203 = vsyncadd (!%p979_p2), %s614_s16, 4294967168  ;;  %p21_p4 = scmp.ge.s32.totalorder %s1404_s18, 5   ;;  %s1594_s21 = smov %s1210_s22 }
 0x341   : > { %s1595_s22 = smov %s1214_s23  ;;  %s1596_s23 = smov %s1414_s14 }
 0x342   : > { %s1597_s24 = smov %s1404_s18  ;;  %23 = sbr.rel (!%p21_p4) target bundleno = 7 (0x7), region = 101 }
 0x349   :  { %619 = vsyncpa [#allocation3], 1 }
 0x34a   :  { %621 = vsyncpa [#allocation3 + $0x1], 1 }
 0x34b   :  { %622 = vsyncpa [#allocation6], 1 }
 0x34c   :  { %623 = vsyncpa [#allocation9], 1 }
 0x34d   :  { %624 = vsyncpa [#allocation4], 1 }
 0x34e   :  { %626 = vsyncpa [#allocation4 + $0x1], 1 }

</bundles_post_ra>
